<compile_context>
chip_gen: v6e
topology: v6e:2x2x1
jax: 0.10.0
libtpu: 0.0.40
codegen_flags: <defaults>
</compile_context>

<pallas_src>
import functools

import jax
import jax.numpy as jnp
from jax import lax
from jax.experimental import pallas as pl
from jax.experimental.pallas import tpu as pltpu


def _round_up(x, m):
    return ((x + m - 1) // m) * m


# ---------------------------------------------------------------------------
# Fused  y = x @ W + b  [+ residual]  [-> ReLU | LayerNorm]  kernel
# ---------------------------------------------------------------------------
def _make_linear_kernel(epilogue, eps):
    def kernel(*refs):
        x_ref, w_ref, b_ref = refs[0], refs[1], refs[2]
        o_ref = refs[-1]

        # Linear (fp32 accumulation on the MXU).
        y = jnp.dot(x_ref[...], w_ref[...], preferred_element_type=jnp.float32)
        y = y + b_ref[...].astype(jnp.float32)          # (tm, N) + (1, N)

        if epilogue == "relu":
            y = jnp.maximum(y, 0.0)
        elif epilogue in ("ln", "residual_ln"):
            if epilogue == "residual_ln":
                res_ref, gamma_ref, beta_ref = refs[3], refs[4], refs[5]
                y = y + res_ref[...].astype(jnp.float32)
            else:
                gamma_ref, beta_ref = refs[3], refs[4]
            # LayerNorm over the last (hidden) axis, fp32 math.
            inv_n = 1.0 / y.shape[-1]
            mean = jnp.sum(y, axis=-1, keepdims=True) * inv_n
            c = y - mean
            var = jnp.sum(c * c, axis=-1, keepdims=True) * inv_n
            y = c * lax.rsqrt(var + eps)
            y = y * gamma_ref[...].astype(jnp.float32) + beta_ref[...].astype(jnp.float32)
        # Dropout: identity in eval mode.
        o_ref[...] = y.astype(o_ref.dtype)

    return kernel


def fused_linear(x2d, w, b, *, epilogue="none", residual=None, gamma=None, beta=None,
                 eps=1e-12, tm=256, mxu_dtype=None, out_dtype=None):
    """x2d: (M, K); w: (K, N); b: (N,). Returns (M, N)."""
    M, K = x2d.shape
    K2, N = w.shape
    assert K == K2
    out_dtype = out_dtype if out_dtype is not None else x2d.dtype

    # Row tile: large enough to feed the MXU and amortize per-grid-step overhead,
    # clamped (and 8-aligned) for small problems; ragged M handled by padding.
    tm_eff = min(int(tm), _round_up(M, 8))
    tm_eff = max(8, _round_up(tm_eff, 8))
    m_pad = _round_up(M, tm_eff)
    if m_pad != M:
        x2d = jnp.pad(x2d, ((0, m_pad - M), (0, 0)))
        if residual is not None:
            residual = jnp.pad(residual, ((0, m_pad - M), (0, 0)))

    if mxu_dtype is not None:               # feed the MXU bf16 (etc.), keep fp32 acc/LN
        x2d = x2d.astype(mxu_dtype)
        w = w.astype(mxu_dtype)

    b2d = b.reshape(1, N).astype(jnp.float32)

    inputs = [x2d, w, b2d]
    in_specs = [
        pl.BlockSpec((tm_eff, K), lambda i: (i, 0)),     # x row-tile (streams)
        pl.BlockSpec((K, N), lambda i: (0, 0)),          # weight (resident)
        pl.BlockSpec((1, N), lambda i: (0, 0)),          # bias
    ]
    if epilogue == "residual_ln":
        inputs.append(residual.astype(jnp.float32))
        in_specs.append(pl.BlockSpec((tm_eff, N), lambda i: (i, 0)))
    if epilogue in ("ln", "residual_ln"):
        inputs.extend([gamma.reshape(1, N).astype(jnp.float32),
                       beta.reshape(1, N).astype(jnp.float32)])
        in_specs.extend([pl.BlockSpec((1, N), lambda i: (0, 0)),
                         pl.BlockSpec((1, N), lambda i: (0, 0))])

    # Scoped-VMEM budget: resident weight + double-buffered streaming tiles.
    bpe = lambda a: jnp.dtype(a.dtype).itemsize
    needed = 2 * (K * N * bpe(w)
                  + tm_eff * K * bpe(x2d)
                  + tm_eff * N * jnp.dtype(out_dtype).itemsize
                  + (tm_eff * N * 4 if epilogue == "residual_ln" else 0)
                  + 3 * N * 4) + (2 << 20)
    vmem_limit = int(min(max(needed, 16 << 20), 100 << 20))

    kernel = _make_linear_kernel(epilogue, float(eps))

    out = pl.pallas_call(
        kernel,
        out_shape=jax.ShapeDtypeStruct((m_pad, N), out_dtype),
        grid_spec=pltpu.PrefetchScalarGridSpec(
            num_scalar_prefetch=0,
            grid=(m_pad // tm_eff,),
            in_specs=in_specs,
            out_specs=pl.BlockSpec((tm_eff, N), lambda i: (i, 0)),
        ),
        compiler_params=pltpu.CompilerParams(
            dimension_semantics=("parallel",),
            vmem_limit_bytes=vmem_limit),
    )(*inputs)

    return out[:M] if m_pad != M else out


# ---------------------------------------------------------------------------
# Attention context kernel:  ctx = (q @ k^T / scale^2) @ v   per batch element.
# (softmax+dropout in the reference are dead code -- their result is discarded.)
# ---------------------------------------------------------------------------
def _attention_kernel(q_ref, k_ref, v_ref, o_ref, *, inv_scale2):
    q = q_ref[0].astype(jnp.float32)        # (nh, S, dh)
    k = k_ref[0].astype(jnp.float32)
    v = v_ref[0].astype(jnp.float32)
    scores = jnp.einsum('hqd,hkd->hqk', q, k,
                        preferred_element_type=jnp.float32) * inv_scale2
    ctx = jnp.einsum('hqk,hkd->hqd', scores, v,
                     preferred_element_type=jnp.float32)
    o_ref[0] = ctx.astype(o_ref.dtype)


def attention_context(q, k, v, *, num_heads, scale):
    """q, k, v: (B, S, H).  Returns context (B, S, H) with the reference's
    .view-based (non-transposing) head split/merge semantics."""
    B, S, H = q.shape
    dh = H // num_heads
    # PyTorch transpose_for_scores uses .view -> pure reshape of the flat buffer.
    q4 = q.reshape(B, num_heads, S, dh)
    k4 = k.reshape(B, num_heads, S, dh)
    v4 = v.reshape(B, num_heads, S, dh)

    kernel = functools.partial(_attention_kernel,
                               inv_scale2=float(1.0 / (scale * scale)))
    ctx4 = pl.pallas_call(
        kernel,
        out_shape=jax.ShapeDtypeStruct((B, num_heads, S, dh), q.dtype),
        grid_spec=pltpu.PrefetchScalarGridSpec(
            num_scalar_prefetch=0,
            grid=(B,),
            in_specs=[pl.BlockSpec((1, num_heads, S, dh), lambda b: (b, 0, 0, 0))] * 3,
            out_specs=pl.BlockSpec((1, num_heads, S, dh), lambda b: (b, 0, 0, 0)),
        ),
        compiler_params=pltpu.CompilerParams(
            dimension_semantics=("parallel",)),
    )(q4, k4, v4)
    # changeViewAtTheEnd + final .view are pure reshapes of the flat buffer.
    return ctx4.reshape(B, S, H)


# ---------------------------------------------------------------------------
# Full Transformer forward
# ---------------------------------------------------------------------------
def transformer_forward(x0, params, *, num_heads, eps, scale, tm=256, mxu_dtype=None):
    B, S, H = x0.shape
    M = B * S
    x2d = x0.reshape(M, H)

    # --- MultiHeadAttention: fused QKV projection + context ---
    wqkv = jnp.concatenate([params['wq'], params['wk'], params['wv']], axis=1)   # (H, 3H)
    bqkv = jnp.concatenate([params['bq'], params['bk'], params['bv']], axis=0)   # (3H,)
    qkv = fused_linear(x2d, wqkv, bqkv, epilogue="none", tm=tm, mxu_dtype=mxu_dtype)
    q, k, v = jnp.split(qkv, 3, axis=1)
    ctx = attention_context(q.reshape(B, S, H), k.reshape(B, S, H),
                            v.reshape(B, S, H), num_heads=num_heads, scale=scale)

    # --- SelfOutput: LayerNorm(dense(ctx) + x0) ---
    h1 = fused_linear(ctx.reshape(M, H), params['w_so'], params['b_so'],
                      epilogue="residual_ln", residual=x2d,
                      gamma=params['g1'], beta=params['beta1'],
                      eps=eps, tm=tm, mxu_dtype=mxu_dtype)

    # --- Intermediate: ReLU(dense(h1)) ---
    inter = fused_linear(h1, params['w_i'], params['b_i'],
                         epilogue="relu", tm=tm, mxu_dtype=mxu_dtype)

    # --- Output: LayerNorm(dense(inter)) ---
    out = fused_linear(inter, params['w_o'], params['b_o'],
                       epilogue="ln", gamma=params['g2'], beta=params['beta2'],
                       eps=eps, tm=tm, mxu_dtype=mxu_dtype)
    return out.reshape(B, S, H)


# ---------------------------------------------------------------------------
# Pure-JAX reference mirroring the PyTorch module exactly.
# ---------------------------------------------------------------------------
def _reference(x0, p, num_heads, eps, scale):
    B, S, H = x0.shape
    dh = H // num_heads
    x2 = x0.reshape(B * S, H)
    q = (x2 @ p['wq'] + p['bq']).reshape(B, num_heads, S, dh)
    k = (x2 @ p['wk'] + p['bk']).reshape(B, num_heads, S, dh)
    v = (x2 @ p['wv'] + p['bv']).reshape(B, num_heads, S, dh)
    scores = jnp.einsum('bhqd,bhkd->bhqk', q, k) / (scale * scale)
    ctx = jnp.einsum('bhqk,bhkd->bhqd', scores, v).reshape(B * S, H)

    def ln(y, g, bta):
        m = y.mean(-1, keepdims=True)
        var = ((y - m) ** 2).mean(-1, keepdims=True)
        return (y - m) / jnp.sqrt(var + eps) * g + bta

    h1 = ln(ctx @ p['w_so'] + p['b_so'] + x2, p['g1'], p['beta1'])
    inter = jnp.maximum(h1 @ p['w_i'] + p['b_i'], 0.0)
    out = ln(inter @ p['w_o'] + p['b_o'], p['g2'], p['beta2'])
    return out.reshape(B, S, H)


if __name__ == "__main__":
    # Small config: hidden_size=32, intermediate_size=64, heads=4, batch=2, seq=8
    B, S, H, I, NH = 2, 8, 32, 64, 4
    EPS = 1e-12
    SCALE = 1.25   # deterministic stand-in for torch.randn(1).item()

    key = jax.random.PRNGKey(0)
    ks = jax.random.split(key, 20)

    def rnd(k, shape, s=0.05):
        return s * jax.random.normal(k, shape, dtype=jnp.float32)

    x0 = jax.random.normal(ks[0], (B, S, H), dtype=jnp.float32)

    params = dict(
        wq=rnd(ks[1], (H, H)),  bq=rnd(ks[2], (H,)),
        wk=rnd(ks[3], (H, H)),  bk=rnd(ks[4], (H,)),
        wv=rnd(ks[5], (H, H)),  bv=rnd(ks[6], (H,)),
        w_so=rnd(ks[7], (H, H)), b_so=rnd(ks[8], (H,)),
        g1=1.0 + rnd(ks[9], (H,)),  beta1=rnd(ks[10], (H,)),
        w_i=rnd(ks[11], (H, I)), b_i=rnd(ks[12], (I,)),
        w_o=rnd(ks[13], (I, H)), b_o=rnd(ks[14], (H,)),
        g2=1.0 + rnd(ks[15], (H,)), beta2=rnd(ks[16], (H,)),
    )

    out = transformer_forward(x0, params, num_heads=NH, eps=EPS, scale=SCALE)
    out = jax.block_until_ready(out)

    ref = _reference(x0, params, NH, EPS, SCALE)

    assert out.shape == (B, S, H)
    assert jnp.all(jnp.isfinite(out))
    assert jnp.allclose(out, ref, atol=2e-4, rtol=2e-4), \
        f"max abs err {jnp.max(jnp.abs(out - ref))}"

    print("KERNEL_OK")
</pallas_src>

<mosaic_0001>
module attributes {stable_mosaic.version = 11 : i64} {
  func.func @kernel(%arg0: i32, %arg1: memref<16x32xf32, #tpu.memory_space<vmem>>, %arg2: memref<32x96xf32, #tpu.memory_space<vmem>>, %arg3: memref<1x96xf32, #tpu.memory_space<vmem>>, %arg4: memref<16x96xf32, #tpu.memory_space<vmem>>) attributes {dimension_semantics = [#tpu.dimension_semantics<parallel>], iteration_bounds = array<i64: 1>, scalar_prefetch = 0 : i64, scratch_operands = 0 : i64, tpu.core_type = #tpu.core_type<tc>, window_params = [{transform_indices = @transform_0, window_bounds = array<i64: 16, 32>}, {pipeline_mode = #tpu.pipeline_mode<synchronous>, transform_indices = @transform_1, window_bounds = array<i64: 32, 96>}, {pipeline_mode = #tpu.pipeline_mode<synchronous>, transform_indices = @transform_2, window_bounds = array<i64: 1, 96>}, {transform_indices = @transform_3, window_bounds = array<i64: 16, 96>}]} {
    %c0 = arith.constant 0 : index
    %c0_0 = arith.constant 0 : index
    %0 = vector.load %arg1[%c0, %c0_0] : memref<16x32xf32, #tpu.memory_space<vmem>>, vector<16x32xf32>
    %c0_1 = arith.constant 0 : index
    %c0_2 = arith.constant 0 : index
    %1 = vector.load %arg2[%c0_1, %c0_2] : memref<32x96xf32, #tpu.memory_space<vmem>>, vector<32x96xf32>
    %cst = arith.constant dense<0.000000e+00> : vector<16x96xf32>
    %2 = tpu.matmul %0, %1, %cst {dimension_numbers = #tpu.dot_dimension_numbers<[1], [0], [0], [1], [0, 0, 1, 1], [], []>} : vector<16x32xf32>, vector<32x96xf32>, vector<16x96xf32> -> vector<16x96xf32>
    %c0_3 = arith.constant 0 : index
    %c0_4 = arith.constant 0 : index
    %3 = vector.load %arg3[%c0_3, %c0_4] : memref<1x96xf32, #tpu.memory_space<vmem>>, vector<1x96xf32>
    %4 = vector.broadcast %3 : vector<1x96xf32> to vector<16x96xf32>
    %5 = arith.addf %2, %4 : vector<16x96xf32>
    %c0_5 = arith.constant 0 : index
    %c0_6 = arith.constant 0 : index
    %6 = vector.load %arg4[%c0_5, %c0_6] : memref<16x96xf32, #tpu.memory_space<vmem>>, vector<16x96xf32>
    tpu.vector_store %arg4[%c0_5, %c0_6], %5 {strides = array<i32>} : memref<16x96xf32, #tpu.memory_space<vmem>>, vector<16x96xf32>,
    return
  }
  func.func @transform_0(%arg0: i32) -> (i32, i32) {
    %c0_i32 = arith.constant 0 : i32
    %c0_i32_0 = arith.constant 0 : i32
    return %arg0, %c0_i32 : i32, i32
  }
  func.func @transform_1(%arg0: i32) -> (i32, i32) {
    %c0_i32 = arith.constant 0 : i32
    %c0_i32_0 = arith.constant 0 : i32
    %c0_i32_1 = arith.constant 0 : i32
    return %c0_i32, %c0_i32_0 : i32, i32
  }
  func.func @transform_2(%arg0: i32) -> (i32, i32) {
    %c0_i32 = arith.constant 0 : i32
    %c0_i32_0 = arith.constant 0 : i32
    %c0_i32_1 = arith.constant 0 : i32
    return %c0_i32, %c0_i32_0 : i32, i32
  }
  func.func @transform_3(%arg0: i32) -> (i32, i32) {
    %c0_i32 = arith.constant 0 : i32
    %c0_i32_0 = arith.constant 0 : i32
    return %arg0, %c0_i32 : i32, i32
  }
}

</mosaic_0001>

<bundles_post_ra>
// kernel: tpu_custom_call.1
= control target key start
LH: loop header
LB: loop body
LE: loop exit
PB: predicated region body
PF: predicated region fallthrough
CT: control target
= control target key end

     0   :  { %8 = vsyncpa [#allocation3], 0  ;;  %s298_s0 = inlined_call_operand.hbm [shape: f32[16,32], index: 0, kind: input, shape index: {}]   ;;  %s299_s1 = inlined_call_operand.hbm [shape: f32[32,96], index: 1, kind: input, shape index: {}]   ;;  %s300_s2 = inlined_call_operand.vmem [shape: f32[1,96], index: 2, kind: input, shape index: {}]   ;;  %s301_s3 = inlined_call_operand.hbm [shape: f32[16,96], index: 3, kind: output, shape index: {}]  }
   0x1   :  { %9 = vsyncpa [#allocation6], 0 }
   0x2   :  { %10 = vsyncpa [#allocation4], 0  ;;  %s250_s12 = smov [#allocation2]  }
   0x3   :  { %s16_s13 = sshll.u32 %s250_s12, 4  ;;  %s17_s13 = int_to_ptr.vmem [resolvable:$true] %s16_s13 }
   0x4   :  { %s192_s14 = scalar_lea.vmem %s17_s13, 256  ;;  %p197_p1 = scmp.lt.s32.totalorder %s17_s13, %s17_s13 }
   0x5   :  { %p193_p0 = scmp.ne.s32.totalorder %s17_s13, %s192_s14  ;;  %p198_p2 = scmp.lt.s32.totalorder %s192_s14, %s192_s14 }
   0x7   :  { %p199_p3 = por %p198_p2, %p197_p1 }
   0x9   :  { %p200_p4 = pnand %p199_p3, %p193_p0 }
   0xb   :  { %203 = shalt.err (!%p200_p4)
}
   0xc   :  { %s251_s15 = smov 128   ;;  %s252_s16 = smov 8  }
   0xd   :  { %22 = dma.hbm_to_vmem [thread:$0]  %s298_s0, 256, %s17_s13, [#allocation3], %s251_s15, %s251_s15, %s252_s16  }
   0xe   :  { %s253_s19 = smov [#allocation5]  }
   0xf   :  { %s28_s20 = sshll.u32 %s253_s19, 4  ;;  %s29_s20 = int_to_ptr.vmem [resolvable:$true] %s28_s20 }
  0x10   :  { %s212_s21 = scalar_lea.vmem %s29_s20, 512  ;;  %p217_p6 = scmp.lt.s32.totalorder %s29_s20, %s29_s20 }
  0x11   :  { %p213_p5 = scmp.ne.s32.totalorder %s29_s20, %s212_s21  ;;  %p218_p7 = scmp.lt.s32.totalorder %s212_s21, %s212_s21 }
  0x13   :  { %p219_p8 = por %p218_p7, %p217_p6 }
  0x15   :  { %p220_p9 = pnand %p219_p8, %p213_p5 }
  0x17   :  { %223 = shalt.err (!%p220_p9)
}
  0x18   :  { %34 = dma.hbm_to_vmem [thread:$0]  %s299_s1, 512, %s29_s20, [#allocation6], %s251_s15, %s251_s15, %s252_s16  }
  0x19   :  { %244 = dma.done.wait [#allocation3], 256  }
  0x1a   :  { %245 = vsyncadd [#allocation3], 4294967040 }
  0x1b   :  { %246 = dma.done.wait [#allocation6], 512  }
  0x1c   :  { %247 = vsyncadd [#allocation6], 4294966784  ;;  %vm56_vm0 = vcmask 261120   ;;  %v48_v0 = vld [vmem:[#allocation5 + $0x18] sm:$0xff]  ;;  %v47_v1 = vld [vmem:[#allocation5 + $0x10] sm:$0xff]  ;;  %vm138_vm1 = vcmask 785408  }
  0x1d   :  { %168 = vmatprep.subr.mxu0 %v48_v0  ;;  %v43_v2 = vld [vmem:[#allocation2] sm:$0xff]  ;;  %v46_v3 = vld [vmem:[#allocation5 + $0x8] sm:$0xff]  ;;  %v45_v4 = vld [vmem:[#allocation5] sm:$0xff]  ;;  %s254_s24 = smov [#allocation7]  }
  0x1e   :  { %169 = vmatpush3.msra.mxu0 %v48_v0  ;;  %176 = vmatprep.mubr.msk.f32.mxu0 %vm56_vm0, %v43_v2  ;;  %v44_v5 = vld [vmem:[#allocation2 + $0x8] sm:$0xff]  ;;  %v159_v6 = vld [vmem:[%s300_s2] ss:$0 sm:$0xff]  ;;  %s146_s25 = sshll.u32 %s254_s24, 4  ;;  %s147_s25 = int_to_ptr.vmem [resolvable:$true] %s146_s25 }
  0x1f   :  { %170 = vmatprep.subr.mxu0 %v47_v1  ;;  %s224_s26 = scalar_lea.vmem %s147_s25, 256  ;;  %p229_p11 = scmp.lt.s32.totalorder %s147_s25, %s147_s25 }
  0x20   :  { %171 = vmatpush3.msra.mxu0 %v47_v1  ;;  %p225_p10 = scmp.ne.s32.totalorder %s147_s25, %s224_s26  ;;  %p230_p12 = scmp.lt.s32.totalorder %s224_s26, %s224_s26 }
  0x21   :  { %172 = vmatprep.subr.mxu0 %v46_v3 }
  0x22   :  { %173 = vmatpush3.msra.mxu0 %v46_v3  ;;  %p231_p13 = por %p230_p12, %p229_p11 }
  0x23   :  { %174 = vmatprep.subr.mxu0 %v45_v4 }
  0x24   :  { %175 = vmatpush3.msra.mxu0 %v45_v4  ;;  %p232_p0 = pnand %p231_p13, %p225_p10 }
  0x25   :  { %177 = vmatmul.mubr.msk.f32.vlgmr.msra.gmra.mxu0 %vm56_vm0, %v44_v5 }
  0xe5   :  { %v178_v7 = vpop.f32.mrf.mxu0 }
  0xe6   :  { %v135_v8 = vadd.f32 %v178_v7, %v159_v6 }
  0xe7   :  { %v129_v9 = vpop.f32.mrf.mxu0 }
  0xe8   :  { %v130_v10 = vadd.f32 %v159_v6, %v129_v9  ;;  %140 = vst.msk [vmem:[#allocation7 + $0x8] sm:$0xff] %vm138_vm1, %v135_v8 }
  0xea   :  { %139 = vst.msk [vmem:[#allocation7] sm:$0xff] %vm138_vm1, %v130_v10 }
  0xeb   :  { %235 = shalt.err (!%p232_p0)
}
  0xec   :  { %152 = dma.vmem_to_hbm [thread:$0]  %s147_s25, 256, %s301_s3, [#allocation4], %s251_s15, %s251_s15, %s252_s16  }
  0xed   :  { %248 = dma.done.wait [#allocation4], 256  }
  0xee   :  { %249 = vsyncadd [#allocation4], 4294967040 }
  0xef   :  { %156 = vsyncpa [#allocation3], 1 }
  0xf0   :  { %157 = vsyncpa [#allocation6], 1 }
  0xf1   :  { %158 = vsyncpa [#allocation4], 1 }

</bundles_post_ra>
